<compile_context>
chip_gen: v5e
topology: v5e:2x2
jax: 0.10.0
libtpu: 0.0.40
codegen_flags: <defaults>
</compile_context>

<pallas_src>
import functools

import jax
import jax.numpy as jnp
from jax import lax
from jax.experimental import pallas as pl
from jax.experimental.pallas import tpu as pltpu

# Same fixed sigmas as the PyTorch module: [1, 4, 8, 16, 24, 32, 64].
SIGMAS = (1.0, 4.0, 8.0, 16.0, 24.0, 32.0, 64.0)

_DEFAULT_TILE = 256  # 256-aligned tiles keep the v6e/v7x 256x256 MXU dense.


def _round_up(a, b):
    return (a + b - 1) // b * b


def _mmd_kernel(zr_ref, zc_ref, out_ref, *, n, m, tile):
    """One (row-tile, col-tile) block of the fused [x;y] gram matrix."""
    i = pl.program_id(0)
    j = pl.program_id(1)
    rows = n + m

    zr = zr_ref[...].astype(jnp.float32)          # (TILE, D)
    zc = zc_ref[...].astype(jnp.float32)          # (TILE, D)

    # Pairwise squared distances via the norm expansion (MXU for the O(T*T*D)
    # part).  Column norms come straight out of a tiny MXU matmul in lane
    # orientation, avoiding the per-tile (T,1)->(1,T) XLU transpose.
    ab = lax.dot_general(zr, zc, (((1,), (1,)), ((), ())),
                         preferred_element_type=jnp.float32)           # (T, T)
    r2 = jnp.sum(zr * zr, axis=1, keepdims=True)                       # (T, 1)
    ones_row = jnp.ones((1, zc.shape[1]), jnp.float32)
    c2 = lax.dot_general(ones_row, zc * zc, (((1,), (1,)), ((), ())),
                         preferred_element_type=jnp.float32)           # (1, T)
    dist = jnp.maximum(r2 - 2.0 * ab + c2, 0.0)                        # (T, T)

    # 7-sigma Gaussian sum with only 2 exps (EUP) + a handful of VPU muls.
    t = jnp.exp(dist * (-1.0 / 128.0))     # sigma = 64
    k32 = t * t                             # sigma = 32
    k16 = k32 * k32                         # sigma = 16
    k8 = k16 * k16                          # sigma = 8
    k4 = k8 * k8                            # sigma = 4
    k2 = k4 * k4                            # intermediate (sigma = 2)
    k1 = k2 * k2                            # sigma = 1
    k24 = jnp.exp(dist * (-1.0 / 48.0))     # sigma = 24 (not a power of t)
    ksum = t + k32 + k16 + k8 + k4 + k1 + k24                          # (T, T)

    # Global row/col indices of this tile -> masks selecting the xx / yy / xy
    # regions of the concatenated gram matrix and dropping padded rows/cols.
    grow = lax.broadcasted_iota(jnp.int32, (tile, 1), 0) + i * tile    # (T, 1)
    gcol = lax.broadcasted_iota(jnp.int32, (1, tile), 1) + j * tile    # (1, T)
    row_x = (grow < n).astype(jnp.float32)
    row_y = jnp.logical_and(grow >= n, grow < rows).astype(jnp.float32)
    col_x = (gcol < n).astype(jnp.float32)
    col_y = jnp.logical_and(gcol >= n, gcol < rows).astype(jnp.float32)

    rx = jnp.sum(ksum * col_x, axis=1, keepdims=True)                  # (T, 1)
    ry = jnp.sum(ksum * col_y, axis=1, keepdims=True)                  # (T, 1)
    s_xx = jnp.sum(rx * row_x, axis=0, keepdims=True)                  # (1, 1)
    s_xy = jnp.sum(ry * row_x, axis=0, keepdims=True)                  # (1, 1)
    s_yy = jnp.sum(ry * row_y, axis=0, keepdims=True)                  # (1, 1)

    # Scaled partial contribution of this tile to the final loss.
    contrib = (s_xx * (1.0 / float(n * n))
               + s_yy * (1.0 / float(m * m))
               - s_xy * (2.0 / float(n * m)))                          # (1, 1)

    @pl.when(j == 0)
    def _():
        out_ref[...] = jnp.zeros_like(out_ref)

    out_ref[...] += jnp.reshape(contrib, (1, 1, 1))


def mmd_loss(source_features, target_features, *, tile=_DEFAULT_TILE):
    """Pallas equivalent of realseries mmd_loss.forward (returns a scalar)."""
    assert source_features.ndim == 2 and target_features.ndim == 2
    assert source_features.shape[1] == target_features.shape[1]
    n, d = source_features.shape
    m, _ = target_features.shape
    rows = n + m

    # Tile size: full (8-aligned) extent for small problems, 256 otherwise.
    tm = _round_up(rows, 8) if rows <= tile else tile
    r = _round_up(rows, tm)
    gi = r // tm
    gj = r // tm

    # Glue: concat + zero-pad to a multiple of the tile (padding is masked
    # out inside the kernel).  Feature dim stays un-tiled (full D per block).
    z = jnp.concatenate([source_features, target_features], axis=0)
    if r > rows:
        z = jnp.pad(z, ((0, r - rows), (0, 0)))

    kernel = functools.partial(_mmd_kernel, n=n, m=m, tile=tm)

    cost = pl.CostEstimate(
        flops=int(2 * r * r * d + 20 * r * r),
        transcendentals=int(2 * r * r),
        bytes_accessed=int(4 * (2 * gi * gj * tm * d + gi)),
    )

    out = pl.pallas_call(
        kernel,
        out_shape=jax.ShapeDtypeStruct((gi, 1, 1), jnp.float32),
        grid_spec=pltpu.PrefetchScalarGridSpec(
            num_scalar_prefetch=0,
            grid=(gi, gj),
            in_specs=[
                pl.BlockSpec((tm, d), lambda i, j: (i, 0)),   # row tile of z
                pl.BlockSpec((tm, d), lambda i, j: (j, 0)),   # col tile of z
            ],
            out_specs=pl.BlockSpec((1, 1, 1), lambda i, j: (i, 0, 0)),
        ),
        compiler_params=pltpu.CompilerParams(
            dimension_semantics=("parallel", "arbitrary"),
            vmem_limit_bytes=32 * 1024 * 1024,
        ),
        cost_estimate=cost,
    )(z, z)

    # Tiny final reduction over per-row-tile partials (lets the row axis stay
    # "parallel" across v7x's two TensorCores).
    return jnp.sum(out)


def _mmd_loss_ref(x, y):
    """Pure-JAX reference mirroring the PyTorch math (for a sanity check)."""
    sigmas = jnp.asarray(SIGMAS, jnp.float32)
    beta = 1.0 / (2.0 * sigmas)

    def pairwise(a, b):
        diff = a[:, :, None] - b.T[None, :, :]             # (N, D, M)
        return jnp.sum(diff * diff, axis=1).T              # (M, N)

    def gk(a, b):
        dd = pairwise(a, b)
        s = beta[:, None] * dd.reshape(1, -1)
        return jnp.sum(jnp.exp(-s), axis=0).reshape(dd.shape)

    return jnp.mean(gk(x, x)) + jnp.mean(gk(y, y)) - 2.0 * jnp.mean(gk(x, y))


if __name__ == "__main__":
    key = jax.random.PRNGKey(0)
    k1, k2 = jax.random.split(key)
    # Small shapes consistent with the module: (batch, hidden) feature matrices.
    source = jax.random.normal(k1, (8, 32), jnp.float32)
    target = jax.random.normal(k2, (16, 32), jnp.float32)

    loss = mmd_loss(source, target)
    jax.block_until_ready(loss)

    ref = _mmd_loss_ref(source, target)
    # Slightly looser tolerance than the naive version: the norm-expansion
    # distance form + repeated-squaring exp trick drift at the ~1e-5 level.
    assert jnp.allclose(loss, ref, rtol=5e-4, atol=1e-5), (loss, ref)

    print("KERNEL_OK")
</pallas_src>

<mosaic_0001>
module attributes {stable_mosaic.version = 11 : i64} {
  func.func @_mmd_kernel(%arg0: i32, %arg1: i32, %arg2: memref<24x32xf32, #tpu.memory_space<vmem>>, %arg3: memref<24x32xf32, #tpu.memory_space<vmem>>, %arg4: memref<1x1x1xf32, #tpu.memory_space<vmem>>) attributes {dimension_semantics = [#tpu.dimension_semantics<parallel>, #tpu.dimension_semantics<arbitrary>], iteration_bounds = array<i64: 1, 1>, scalar_prefetch = 0 : i64, scratch_operands = 0 : i64, tpu.core_type = #tpu.core_type<tc>, window_params = [{transform_indices = @transform_0, window_bounds = array<i64: 24, 32>}, {transform_indices = @transform_1, window_bounds = array<i64: 24, 32>}, {transform_indices = @transform_2, window_bounds = array<i64: 1, 1, 1>}]} {
    %c0 = arith.constant 0 : index
    %c0_0 = arith.constant 0 : index
    %0 = vector.load %arg2[%c0, %c0_0] : memref<24x32xf32, #tpu.memory_space<vmem>>, vector<24x32xf32>
    %c0_1 = arith.constant 0 : index
    %c0_2 = arith.constant 0 : index
    %1 = vector.load %arg3[%c0_1, %c0_2] : memref<24x32xf32, #tpu.memory_space<vmem>>, vector<24x32xf32>
    %cst = arith.constant dense<0.000000e+00> : vector<24x24xf32>
    %2 = tpu.matmul %0, %1, %cst {dimension_numbers = #tpu.dot_dimension_numbers<[1], [1], [0], [0], [0, 0, 1, 0], [], []>} : vector<24x32xf32>, vector<24x32xf32>, vector<24x24xf32> -> vector<24x24xf32>
    %3 = arith.mulf %0, %0 : vector<24x32xf32>
    %cst_3 = arith.constant dense<0.000000e+00> : vector<24xf32>
    %4 = vector.multi_reduction <add>, %3, %cst_3 [1] : vector<24x32xf32> to vector<24xf32>
    %5 = vector.shape_cast %4 : vector<24xf32> to vector<24x1xf32>
    %cst_4 = arith.constant 1.000000e+00 : f32
    %6 = vector.broadcast %cst_4 : f32 to vector<1x32xf32>
    %7 = arith.mulf %1, %1 : vector<24x32xf32>
    %cst_5 = arith.constant dense<0.000000e+00> : vector<1x24xf32>
    %8 = tpu.matmul %6, %7, %cst_5 {dimension_numbers = #tpu.dot_dimension_numbers<[1], [1], [0], [0], [0, 0, 1, 0], [], []>} : vector<1x32xf32>, vector<24x32xf32>, vector<1x24xf32> -> vector<1x24xf32>
    %cst_6 = arith.constant 2.000000e+00 : f32
    %9 = vector.broadcast %cst_6 : f32 to vector<24x24xf32>
    %10 = arith.mulf %9, %2 : vector<24x24xf32>
    %11 = vector.broadcast %5 : vector<24x1xf32> to vector<24x24xf32>
    %12 = arith.subf %11, %10 : vector<24x24xf32>
    %13 = vector.broadcast %8 : vector<1x24xf32> to vector<24x24xf32>
    %14 = arith.addf %12, %13 : vector<24x24xf32>
    %cst_7 = arith.constant 0.000000e+00 : f32
    %15 = vector.broadcast %cst_7 : f32 to vector<24x24xf32>
    %16 = arith.maximumf %14, %15 : vector<24x24xf32>
    %cst_8 = arith.constant -7.812500e-03 : f32
    %17 = vector.broadcast %cst_8 : f32 to vector<24x24xf32>
    %18 = arith.mulf %16, %17 : vector<24x24xf32>
    %19 = math.exp %18 : vector<24x24xf32>
    %20 = arith.mulf %19, %19 : vector<24x24xf32>
    %21 = arith.mulf %20, %20 : vector<24x24xf32>
    %22 = arith.mulf %21, %21 : vector<24x24xf32>
    %23 = arith.mulf %22, %22 : vector<24x24xf32>
    %24 = arith.mulf %23, %23 : vector<24x24xf32>
    %25 = arith.mulf %24, %24 : vector<24x24xf32>
    %cst_9 = arith.constant -0.020833334 : f32
    %26 = vector.broadcast %cst_9 : f32 to vector<24x24xf32>
    %27 = arith.mulf %16, %26 : vector<24x24xf32>
    %28 = math.exp %27 : vector<24x24xf32>
    %29 = arith.addf %19, %20 : vector<24x24xf32>
    %30 = arith.addf %29, %21 : vector<24x24xf32>
    %31 = arith.addf %30, %22 : vector<24x24xf32>
    %32 = arith.addf %31, %23 : vector<24x24xf32>
    %33 = arith.addf %32, %25 : vector<24x24xf32>
    %34 = arith.addf %33, %28 : vector<24x24xf32>
    %35 = tpu.iota {dimensions = array<i32: 0>} : vector<24x1xi32>
    %c24_i32 = arith.constant 24 : i32
    %36 = arith.muli %arg0, %c24_i32 : i32
    %37 = vector.broadcast %36 : i32 to vector<24x1xi32>
    %38 = arith.addi %35, %37 : vector<24x1xi32>
    %39 = tpu.iota {dimensions = array<i32: 1>} : vector<1x24xi32>
    %c24_i32_10 = arith.constant 24 : i32
    %40 = arith.muli %arg1, %c24_i32_10 : i32
    %41 = vector.broadcast %40 : i32 to vector<1x24xi32>
    %42 = arith.addi %39, %41 : vector<1x24xi32>
    %c8_i32 = arith.constant 8 : i32
    %43 = vector.broadcast %c8_i32 : i32 to vector<24x1xi32>
    %44 = arith.cmpi slt, %38, %43 : vector<24x1xi32>
    %45 = arith.extui %44 : vector<24x1xi1> to vector<24x1xi32>
    %46 = arith.sitofp %45 : vector<24x1xi32> to vector<24x1xf32>
    %c8_i32_11 = arith.constant 8 : i32
    %47 = vector.broadcast %c8_i32_11 : i32 to vector<24x1xi32>
    %48 = arith.cmpi sge, %38, %47 : vector<24x1xi32>
    %c24_i32_12 = arith.constant 24 : i32
    %49 = vector.broadcast %c24_i32_12 : i32 to vector<24x1xi32>
    %50 = arith.cmpi slt, %38, %49 : vector<24x1xi32>
    %51 = arith.andi %48, %50 : vector<24x1xi1>
    %52 = arith.extui %51 : vector<24x1xi1> to vector<24x1xi32>
    %53 = arith.sitofp %52 : vector<24x1xi32> to vector<24x1xf32>
    %c8_i32_13 = arith.constant 8 : i32
    %54 = vector.broadcast %c8_i32_13 : i32 to vector<1x24xi32>
    %55 = arith.cmpi slt, %42, %54 : vector<1x24xi32>
    %56 = arith.extui %55 : vector<1x24xi1> to vector<1x24xi32>
    %57 = arith.sitofp %56 : vector<1x24xi32> to vector<1x24xf32>
    %c8_i32_14 = arith.constant 8 : i32
    %58 = vector.broadcast %c8_i32_14 : i32 to vector<1x24xi32>
    %59 = arith.cmpi sge, %42, %58 : vector<1x24xi32>
    %c24_i32_15 = arith.constant 24 : i32
    %60 = vector.broadcast %c24_i32_15 : i32 to vector<1x24xi32>
    %61 = arith.cmpi slt, %42, %60 : vector<1x24xi32>
    %62 = arith.andi %59, %61 : vector<1x24xi1>
    %63 = arith.extui %62 : vector<1x24xi1> to vector<1x24xi32>
    %64 = arith.sitofp %63 : vector<1x24xi32> to vector<1x24xf32>
    %65 = vector.broadcast %57 : vector<1x24xf32> to vector<24x24xf32>
    %66 = arith.mulf %34, %65 : vector<24x24xf32>
    %cst_16 = arith.constant dense<0.000000e+00> : vector<24xf32>
    %67 = vector.multi_reduction <add>, %66, %cst_16 [1] : vector<24x24xf32> to vector<24xf32>
    %68 = vector.shape_cast %67 : vector<24xf32> to vector<24x1xf32>
    %69 = vector.broadcast %64 : vector<1x24xf32> to vector<24x24xf32>
    %70 = arith.mulf %34, %69 : vector<24x24xf32>
    %cst_17 = arith.constant dense<0.000000e+00> : vector<24xf32>
    %71 = vector.multi_reduction <add>, %70, %cst_17 [1] : vector<24x24xf32> to vector<24xf32>
    %72 = vector.shape_cast %71 : vector<24xf32> to vector<24x1xf32>
    %73 = arith.mulf %68, %46 : vector<24x1xf32>
    %cst_18 = arith.constant dense<0.000000e+00> : vector<1xf32>
    %74 = vector.multi_reduction <add>, %73, %cst_18 [0] : vector<24x1xf32> to vector<1xf32>
    %75 = vector.shape_cast %74 : vector<1xf32> to vector<1x1xf32>
    %76 = arith.mulf %72, %46 : vector<24x1xf32>
    %cst_19 = arith.constant dense<0.000000e+00> : vector<1xf32>
    %77 = vector.multi_reduction <add>, %76, %cst_19 [0] : vector<24x1xf32> to vector<1xf32>
    %78 = vector.shape_cast %77 : vector<1xf32> to vector<1x1xf32>
    %79 = arith.mulf %72, %53 : vector<24x1xf32>
    %cst_20 = arith.constant dense<0.000000e+00> : vector<1xf32>
    %80 = vector.multi_reduction <add>, %79, %cst_20 [0] : vector<24x1xf32> to vector<1xf32>
    %81 = vector.shape_cast %80 : vector<1xf32> to vector<1x1xf32>
    %cst_21 = arith.constant 1.562500e-02 : f32
    %82 = vector.broadcast %cst_21 : f32 to vector<1x1xf32>
    %83 = arith.mulf %75, %82 : vector<1x1xf32>
    %cst_22 = arith.constant 3.906250e-03 : f32
    %84 = vector.broadcast %cst_22 : f32 to vector<1x1xf32>
    %85 = arith.mulf %81, %84 : vector<1x1xf32>
    %86 = arith.addf %83, %85 : vector<1x1xf32>
    %cst_23 = arith.constant 1.562500e-02 : f32
    %87 = vector.broadcast %cst_23 : f32 to vector<1x1xf32>
    %88 = arith.mulf %78, %87 : vector<1x1xf32>
    %89 = arith.subf %86, %88 : vector<1x1xf32>
    %c0_i32 = arith.constant 0 : i32
    %90 = arith.cmpi eq, %arg1, %c0_i32 : i32
    %91 = arith.extui %90 : i1 to i32
    %c0_i32_24 = arith.constant 0 : i32
    %92 = arith.cmpi ne, %91, %c0_i32_24 : i32
    scf.if %92 {
      %cst_31 = arith.constant 0.000000e+00 : f32
      %97 = vector.broadcast %cst_31 : f32 to vector<1x1x1xf32>
      %c0_32 = arith.constant 0 : index
      %c0_33 = arith.constant 0 : index
      %c0_34 = arith.constant 0 : index
      %98 = vector.load %arg4[%c0_32, %c0_33, %c0_34] : memref<1x1x1xf32, #tpu.memory_space<vmem>>, vector<1x1x1xf32>
      tpu.vector_store %arg4[%c0_32, %c0_33, %c0_34], %97 {strides = array<i32>} : memref<1x1x1xf32, #tpu.memory_space<vmem>>, vector<1x1x1xf32>,
    } else {
    }
    %c0_25 = arith.constant 0 : index
    %c0_26 = arith.constant 0 : index
    %c0_27 = arith.constant 0 : index
    %93 = vector.load %arg4[%c0_25, %c0_26, %c0_27] : memref<1x1x1xf32, #tpu.memory_space<vmem>>, vector<1x1x1xf32>
    %94 = vector.shape_cast %89 : vector<1x1xf32> to vector<1x1x1xf32>
    %95 = arith.addf %93, %94 : vector<1x1x1xf32>
    %c0_28 = arith.constant 0 : index
    %c0_29 = arith.constant 0 : index
    %c0_30 = arith.constant 0 : index
    %96 = vector.load %arg4[%c0_28, %c0_29, %c0_30] : memref<1x1x1xf32, #tpu.memory_space<vmem>>, vector<1x1x1xf32>
    tpu.vector_store %arg4[%c0_28, %c0_29, %c0_30], %95 {strides = array<i32>} : memref<1x1x1xf32, #tpu.memory_space<vmem>>, vector<1x1x1xf32>,
    return
  }
  func.func @transform_0(%arg0: i32, %arg1: i32) -> (i32, i32) {
    %c0_i32 = arith.constant 0 : i32
    %c0_i32_0 = arith.constant 0 : i32
    return %arg0, %c0_i32 : i32, i32
  }
  func.func @transform_1(%arg0: i32, %arg1: i32) -> (i32, i32) {
    %c0_i32 = arith.constant 0 : i32
    %c0_i32_0 = arith.constant 0 : i32
    return %arg1, %c0_i32 : i32, i32
  }
  func.func @transform_2(%arg0: i32, %arg1: i32) -> (i32, i32, i32) {
    %c0_i32 = arith.constant 0 : i32
    %c0_i32_0 = arith.constant 0 : i32
    %c0_i32_1 = arith.constant 0 : i32
    return %arg0, %c0_i32, %c0_i32_0 : i32, i32, i32
  }
}

</mosaic_0001>

<bundles_post_ra>
// kernel: tpu_custom_call.1
= control target key start
LH: loop header
LB: loop body
LE: loop exit
PB: predicated region body
PF: predicated region fallthrough
CT: control target
= control target key end

     0   :  { %7 = vsyncpa [#allocation3], 0  ;;  %s522_s0 = inlined_call_operand.hbm [shape: f32[24,32], index: 0, kind: input, shape index: {}]   ;;  %s523_s1 = inlined_call_operand.hbm [shape: f32[24,32], index: 1, kind: input, shape index: {}]   ;;  %s524_s2 = inlined_call_operand.hbm [shape: f32[1,1,1], index: 2, kind: output, shape index: {}]  }
   0x1   :  { %8 = vsyncpa [#allocation6], 0 }
   0x2   :  { %9 = vsyncpa [#allocation4], 0  ;;  %s14_s11 = sshll.u32 %s522_s0, 4  ;;  %s461_s12 = smov [#allocation2]   ;;  %s15_s11 = int_to_ptr.hbm [resolvable:$true] %s14_s11 }
   0x3   :  { %s16_s13 = sshll.u32 %s461_s12, 4  ;;  %s27_s16 = sshll.u32 %s523_s1, 4  ;;  %s17_s13 = int_to_ptr.vmem [resolvable:$true] %s16_s13  ;;  %s28_s16 = int_to_ptr.hbm [resolvable:$true] %s27_s16 }
   0x4   :  { %s462_s17 = smov 128   ;;  %s463_s18 = smov 8  }
   0x5   :  { %22 = dma.hbm_to_vmem [thread:$0]  %s15_s11, 384, %s17_s13, [#allocation3], %s462_s17, %s462_s17, %s463_s18  }
   0x6   :  { %s464_s19 = smov [#allocation5]  }
   0x7   :  { %s29_s20 = sshll.u32 %s464_s19, 4  ;;  %s30_s20 = int_to_ptr.vmem [resolvable:$true] %s29_s20 }
   0x8   :  { %35 = dma.hbm_to_vmem [thread:$0]  %s28_s16, 384, %s30_s20, [#allocation6], %s462_s17, %s462_s17, %s463_s18  }
   0x9   :  { %455 = dma.done.wait [#allocation3], 384  }
   0xa   :  { %456 = vsyncadd [#allocation3], 4294966912 }
   0xb   :  { %457 = dma.done.wait [#allocation6], 384  }
   0xc   :  { %458 = vsyncadd [#allocation6], 4294966912  ;;  %vm50_vm0 = vcmask 261120   ;;  %v49_v0 = vld [vmem:[#allocation5 + $0x10] sm:$0xff]  ;;  %v48_v1 = vld [vmem:[#allocation5 + $0x8] sm:$0xff]  ;;  %v465_v15 = vmov 1.0   ;;  %v218_v45 = vlaneseq }
   0xd   :  { %346 = vmatpush.xpose.msk.msra.mxu0 %vm50_vm0, %v49_v0  ;;  %358 = vmatpush.xpose.msk.msra.mxu2 %vm50_vm0, %v49_v0  ;;  %v109_v2 = vmul.f32 %v49_v0, %v49_v0  ;;  %v44_v3 = vld [vmem:[#allocation2] sm:$0xff]  ;;  %v46_v4 = vld [vmem:[#allocation2 + $0x10] sm:$0xff]  ;;  %v108_v7 = vmul.f32 %v48_v1, %v48_v1  ;;  %v47_v8 = vld [vmem:[#allocation5] sm:$0xff]  ;;  %vm322_vm1 = vcmask 0   ;;  %v466_v29 = vmov 0.0   ;;  %s467_s0 = smov [#allocation7]  }
   0xe   :  { %359 = vmatpush.xpose.msk.msra.mxu3 %vm50_vm0, %v49_v0  ;;  %v95_v5 = vmul.f32 %v44_v3, %v44_v3  ;;  %v97_v6 = vmul.f32 %v46_v4, %v46_v4  ;;  %v45_v11 = vld [vmem:[#allocation2 + $0x8] sm:$0xff]  ;;  %v107_v12 = vmul.f32 %v47_v8, %v47_v8  ;;  %323 = vst.msk [vmem:[#allocation7] sm:$0x1] %vm322_vm1, %v466_v29  ;;  %v219_v50 = vand.u32 127, %v218_v45  ;;  %s333_s1 = sshll.u32 %s467_s0, 4  ;;  %s335_s23 = sshll.u32 %s524_s2, 4  ;;  %s334_s1 = int_to_ptr.vmem [resolvable:$true] %s333_s1  ;;  %s336_s23 = int_to_ptr.hbm [resolvable:$true] %s335_s23 }
   0xf   :  { %352 = vmatpush.xpose.msk.msra.mxu1 %vm50_vm0, %v109_v2  ;;  %v96_v13 = vmul.f32 %v45_v11, %v45_v11  ;;  %vm258_vm5 = vcmask 195584  }
  0x10   :  { %v98_v9 = vsel %vm50_vm0, %v95_v5, 0.0  ;;  %v104_v10 = vsel %vm50_vm0, %v97_v6, 0.0  ;;  %vm250_vm2 = vcmp.ge.s32.totalorder %v219_v50, 8  ;;  %vm251_vm3 = vcmp.lt.s32.totalorder %v219_v50, 24 }
  0x11   :  { %347 = vmatpush.xpose.msk.msra.mxu0 %vm50_vm0, %v48_v1  ;;  %360 = vmatpush.xpose.msk.msra.mxu2 %vm50_vm0, %v48_v1  ;;  %v101_v14 = vsel %vm50_vm0, %v96_v13, 0.0  ;;  %vm252_vm4 = vmand %vm250_vm2, %vm251_vm3  ;;  %vm247_vm6 = vcmp.lt.s32.totalorder %v219_v50, 8 }
  0x12   :  { %361 = vmatpush.xpose.msk.msra.mxu3 %vm50_vm0, %v48_v1  ;;  %99 = vadd.xlane.f32.xlu0 %v98_v9 }
  0x13   :  { %353 = vmatpush.xpose.msk.msra.mxu1 %vm50_vm0, %v108_v7  ;;  %105 = vadd.xlane.f32.xlu1 %v104_v10 }
  0x15   :  { %348 = vmatpush.xpose.msk.msra.mxu0 %vm50_vm0, %v47_v8  ;;  %362 = vmatpush.xpose.msk.msra.mxu2 %vm50_vm0, %v47_v8 }
  0x16   :  { %363 = vmatpush.xpose.msk.msra.mxu3 %vm50_vm0, %v47_v8 }
  0x17   :  { %354 = vmatpush.xpose.msk.msra.mxu1 %vm50_vm0, %v107_v12 }
  0x18   :  { %349 = vmatmul.msk.f32.vlgmr.msra.gmra.mxu0 %vm50_vm0, %v44_v3  ;;  %350 = vmatmul.msk.f32.vlgmr.msra.gmra.mxu2 %vm50_vm0, %v45_v11 }
  0x19   :  { %351 = vmatmul.msk.f32.vlgmr.msra.gmra.mxu3 %vm50_vm0, %v46_v4 }
  0x1a   :  { %355 = vmatmul.msk.f32.vlgmr.msra.gmra.mxu1 %vm50_vm0, %v465_v15  ;;  %102 = vadd.xlane.f32.xlu0 %v101_v14  ;;  %v357_v14 = vsel %vm252_vm4, 1.0, %v466_v29 }
  0x85   :  { %v100_v16 = vpop.xlane.xlu0 %99 }
  0x86   :  { %v106_v28 = vpop.xlane.xlu1 %105 }
  0x8d   :  { %v103_v24 = vpop.xlane.xlu0 %102 }
  0x95   :  { %v86_v17 = vpop.f32.mrf.mxu0 }
  0x96   :  { %v142_v18 = vmul.f32 2.0, %v86_v17 }
  0x97   :  { %v139_v19 = vpop.f32.mrf.mxu1 }
  0x98   :  { %v145_v20 = vsub.f32 %v100_v16, %v142_v18  ;;  %v148_v21 = vperm.slane %v139_v19, 0 }
  0x9a   :  { %v149_v22 = vadd.f32 %v148_v21, %v145_v20 }
  0x9b   :  { %v89_v23 = vpop.f32.mrf.mxu2 }
  0x9c   :  { %v152_v25 = vmax.f32 %v149_v22, 0.0  ;;  %v143_v26 = vmul.f32 2.0, %v89_v23  ;;  %v92_v27 = vpop.f32.mrf.mxu3 }
  0x9d   :  { %v144_v30 = vmul.f32 2.0, %v92_v27 }
  0x9e   :  { %v155_v31 = vmul.f32 -0.0078125, %v152_v25  ;;  %v146_v32 = vsub.f32 %v103_v24, %v143_v26  ;;  %v182_v44 = vmul.f32 -0.020833334, %v152_v25 }
  0x9f   :  { %v147_v33 = vsub.f32 %v106_v28, %v144_v30  ;;  %v356_v30 = vsel %vm247_vm6, 1.0, %v466_v29 }
  0xa0   :  { %v158_v34 = vmul.f32 1.442695, %v155_v31  ;;  %v150_v35 = vadd.f32 %v148_v21, %v146_v32  ;;  %v185_v49 = vmul.f32 1.442695, %v182_v44 }
  0xa1   :  { %v151_v36 = vadd.f32 %v148_v21, %v147_v33 }
  0xa2   :  { %371 = vpow2.f32 %v158_v34  ;;  %v153_v37 = vmax.f32 %v150_v35, 0.0 }
  0xa3   :  { %v154_v38 = vmax.f32 %v151_v36, 0.0 }
  0xa4   :  { %v156_v39 = vmul.f32 -0.0078125, %v153_v37  ;;  %v183_v55 = vmul.f32 -0.020833334, %v153_v37 }
  0xa5   :  { %v157_v40 = vmul.f32 -0.0078125, %v154_v38  ;;  %v184_v54 = vmul.f32 -0.020833334, %v154_v38 }
  0xa6   :  { %v160_v41 = vmul.f32 1.442695, %v156_v39  ;;  %v187_v2 = vmul.f32 1.442695, %v183_v55 }
  0xa7   :  { %v162_v42 = vmul.f32 1.442695, %v157_v40  ;;  %v189_v0 = vmul.f32 1.442695, %v184_v54 }
  0xa8   :  { %v372_v43 = vpop.eup %371  ;;  %373 = vpow2.f32 %v160_v41 }
  0xa9   :  { %v164_v46 = vmul.f32 %v372_v43, %v372_v43  ;;  %375 = vpow2.f32 %v162_v42 }
  0xaa   :  { %377 = vpow2.f32 %v185_v49 }
  0xab   :  { %v167_v47 = vmul.f32 %v164_v46, %v164_v46  ;;  %v191_v48 = vadd.f32 %v372_v43, %v164_v46  ;;  %379 = vpow2.f32 %v187_v2 }
  0xac   :  { %381 = vpow2.f32 %v189_v0 }
  0xad   :  { %v170_v51 = vmul.f32 %v167_v47, %v167_v47  ;;  %v194_v52 = vadd.f32 %v191_v48, %v167_v47 }
  0xae   :  { %v374_v53 = vpop.eup %373 }
  0xaf   :  { %v376_v56 = vpop.eup %375  ;;  %v165_v57 = vmul.f32 %v374_v53, %v374_v53  ;;  %v173_v58 = vmul.f32 %v170_v51, %v170_v51  ;;  %v197_v59 = vadd.f32 %v194_v52, %v170_v51 }
  0xb0   :  { %v166_v60 = vmul.f32 %v376_v56, %v376_v56  ;;  %v378_v13 = vpop.eup %377 }
  0xb1   :  { %v192_v61 = vadd.f32 %v374_v53, %v165_v57  ;;  %v176_v62 = vmul.f32 %v173_v58, %v173_v58  ;;  %v168_v63 = vmul.f32 %v165_v57, %v165_v57  ;;  %v200_v5 = vadd.f32 %v197_v59, %v173_v58  ;;  %v380_v27 = vpop.eup %379 }
  0xb2   :  { %v193_v1 = vadd.f32 %v376_v56, %v166_v60  ;;  %v169_v3 = vmul.f32 %v166_v60, %v166_v60  ;;  %v382_v31 = vpop.eup %381 }
  0xb3   :  { %v179_v4 = vmul.f32 %v176_v62, %v176_v62  ;;  %v171_v6 = vmul.f32 %v168_v63, %v168_v63  ;;  %v195_v7 = vadd.f32 %v192_v61, %v168_v63 }
  0xb4   :  { %v172_v8 = vmul.f32 %v169_v3, %v169_v3  ;;  %v196_v9 = vadd.f32 %v193_v1, %v169_v3 }
  0xb5   :  { %v203_v10 = vadd.f32 %v200_v5, %v179_v4  ;;  %v174_v11 = vmul.f32 %v171_v6, %v171_v6  ;;  %v198_v12 = vadd.f32 %v195_v7, %v171_v6 }
  0xb6   :  { %v175_v15 = vmul.f32 %v172_v8, %v172_v8  ;;  %v199_v16 = vadd.f32 %v196_v9, %v172_v8 }
  0xb7   :  { %v206_v17 = vadd.f32 %v378_v13, %v203_v10  ;;  %v177_v18 = vmul.f32 %v174_v11, %v174_v11  ;;  %v201_v22 = vadd.f32 %v198_v12, %v174_v11 }
  0xb8   :  { %v178_v19 = vmul.f32 %v175_v15, %v175_v15  ;;  %v202_v24 = vadd.f32 %v199_v16, %v175_v15 }
  0xb9   :  { %v268_v20 = vmul.f32 %v357_v14, %v206_v17  ;;  %v180_v21 = vmul.f32 %v177_v18, %v177_v18  ;;  %v255_v35 = vmul.f32 %v356_v30, %v206_v17  ;;  %v324_v18 = vld [vmem:[#allocation7] sm:$0x1] }
  0xba   :  { %v181_v23 = vmul.f32 %v178_v19, %v178_v19 }
  0xbb   :  { %v271_v25 = vsel %vm258_vm5, %v268_v20, 0.0  ;;  %v204_v26 = vadd.f32 %v201_v22, %v180_v21  ;;  %v259_v39 = vsel %vm258_vm5, %v255_v35, 0.0 }
  0xbc   :  { %272 = vadd.xlane.f32.xlu2 %v271_v25  ;;  %v205_v28 = vadd.f32 %v202_v24, %v181_v23 }
  0xbd   :  { %v207_v32 = vadd.f32 %v380_v27, %v204_v26 }
  0xbe   :  { %v208_v33 = vadd.f32 %v382_v31, %v205_v28 }
  0xbf   :  { %v256_v34 = vmul.f32 %v356_v30, %v207_v32  ;;  %v269_v40 = vmul.f32 %v357_v14, %v207_v32 }
  0xc0   :  { %v257_v36 = vmul.f32 %v356_v30, %v208_v33  ;;  %v270_v41 = vmul.f32 %v357_v14, %v208_v33 }
  0xc1   :  { %v262_v37 = vsel %vm258_vm5, %v256_v34, 0.0  ;;  %v274_v42 = vsel %vm258_vm5, %v269_v40, 0.0 }
  0xc2   :  { %v265_v38 = vsel %vm258_vm5, %v257_v36, 0.0  ;;  %263 = vadd.xlane.f32.xlu1 %v262_v37  ;;  %v277_v29 = vsel %vm258_vm5, %v270_v41, 0.0 }
  0xc3   :  { %266 = vadd.xlane.f32.xlu0 %v265_v38 }
  0xc4   :  { %260 = vadd.xlane.f32.xlu2 %v259_v39 }
  0xca   :  { %275 = vadd.xlane.f32.xlu1 %v274_v42 }
  0xcc   :  { %278 = vadd.xlane.f32.xlu2 %v277_v29 }
 0x12f   :  { %v273_v43 = vpop.xlane.xlu2 %272 }
 0x130   :  { %v302_v51 = vmul.f32 0.0, %v273_v43 }
 0x135   :  { %v264_v44 = vpop.xlane.xlu1 %263 }
 0x136   :  { %v281_v45 = vmul.f32 0.0, %v264_v44  ;;  %v267_v46 = vpop.xlane.xlu0 %266 }
 0x137   :  { %v261_v47 = vpop.xlane.xlu2 %260  ;;  %v282_v48 = vmul.f32 0.0, %v267_v46 }
 0x138   :  { %v283_v49 = vadd.f32 %v281_v45, %v261_v47 }
 0x13a   :  { %v284_v50 = vadd.f32 %v283_v49, %v282_v48 }
 0x13c   :  { %v285_v52 = vrot.slane %v284_v50, 4 }
 0x13d   :  { %v276_v53 = vpop.xlane.xlu1 %275 }
 0x13e   :  { %v286_v54 = vadd.f32 %v285_v52, %v284_v50  ;;  %v292_v55 = vmul.f32 0.0, %v276_v53  ;;  %v305_v56 = vadd.f32 %v302_v51, %v276_v53 }
 0x13f   :  { %v279_v57 = vpop.xlane.xlu2 %278 }
 0x140   :  { %v287_v58 = vrot.slane %v286_v54, 2  ;;  %v294_v59 = vadd.f32 %v292_v55, %v273_v43  ;;  %v293_v60 = vmul.f32 0.0, %v279_v57  ;;  %v306_v61 = vadd.f32 %v305_v56, %v279_v57 }
 0x142   :  { %v288_v62 = vadd.f32 %v287_v58, %v286_v54  ;;  %v295_v63 = vadd.f32 %v294_v59, %v293_v60  ;;  %v307_v0 = vrot.slane %v306_v61, 4 }
 0x144   :  { %v296_v1 = vrot.slane %v295_v63, 4  ;;  %v308_v2 = vadd.f32 %v307_v0, %v306_v61  ;;  %v289_v3 = vrot.slane %v288_v62, 1 }
 0x146   :  { %v297_v4 = vadd.f32 %v296_v1, %v295_v63  ;;  %v309_v5 = vrot.slane %v308_v2, 2  ;;  %v290_v8 = vadd.f32 %v289_v3, %v288_v62 }
 0x148   :  { %v298_v6 = vrot.slane %v297_v4, 2  ;;  %v310_v7 = vadd.f32 %v309_v5, %v308_v2  ;;  %v313_v13 = vmul.f32 0.015625, %v290_v8 }
 0x14a   :  { %v299_v9 = vadd.f32 %v298_v6, %v297_v4  ;;  %v311_v10 = vrot.slane %v310_v7, 1 }
 0x14c   :  { %v300_v11 = vrot.slane %v299_v9, 1  ;;  %v312_v12 = vadd.f32 %v311_v10, %v310_v7 }
 0x14e   :  { %v301_v14 = vadd.f32 %v300_v11, %v299_v9  ;;  %v314_v15 = vmul.f32 0.00390625, %v312_v12 }
 0x150   :  { %v315_v16 = vadd.f32 %v314_v15, %v313_v13  ;;  %v316_v17 = vmul.f32 0.015625, %v301_v14 }
 0x152   :  { %v317_v19 = vsub.f32 %v315_v16, %v316_v17 }
 0x154   :  { %v325_v20 = vadd.f32 %v324_v18, %v317_v19 }
 0x156   :  { %327 = vst.msk [vmem:[#allocation7] sm:$0x1] %vm322_vm1, %v325_v20 }
 0x157   :  { %338 = dma.vmem_to_hbm [thread:$0]  %s334_s1, 16, %s336_s23, [#allocation4]  }
 0x158   :  { %459 = dma.done.wait [#allocation4], 16  }
 0x159   :  { %460 = vsyncadd [#allocation4], 4294967280 }
 0x15a   :  { %343 = vsyncpa [#allocation3], 1 }
 0x15b   :  { %344 = vsyncpa [#allocation6], 1 }
 0x15c   :  { %345 = vsyncpa [#allocation4], 1 }

</bundles_post_ra>
